<compile_context>
chip_gen: v6e
topology: v6e:2x2x1
jax: 0.10.0
libtpu: 0.0.40
codegen_flags: <defaults>
</compile_context>

<pallas_src>
import jax
import jax.numpy as jnp
from jax.experimental import pallas as pl
from jax.experimental.pallas import tpu as pltpu


# ----------------------------- kernels ------------------------------------ #

def _self_dot_kernel(x_ref, o_ref):
    # energy = <flatten(deepseq), flatten(deepseq)>
    x = x_ref[...]
    o_ref[0, 0] = jnp.sum(x * x)


def _fused_dot_kernel(x_ref, u_ref, o_ref):
    # 'concat' after folding v into the params:
    #   energy = v . (deepseq @ w_seq + govec @ w_go + b)
    #          = deepseq . u_seq + govec . u_go + sum(v*b)
    #          = <x_aug, u_aug>   with the trailing 1.0 / c elements packed in.
    o_ref[0, 0] = jnp.sum(x_ref[...] * u_ref[...])


def _general_kernel(deepseq_ref, govec_ref, w_ref, o_ref):
    # w_ref packed: rows 0..G-1 = W (stored (G, S)), row G = bias.
    # govec_ref: (B, G+1) with the last column == 1.0 (appended at trace time),
    # so energy = govec_aug @ w_packed == govec @ W + b with no bias broadcast
    # and no in-kernel relayout. One tiny MXU pass; latency hides under DMA.
    energy = jnp.dot(govec_ref[...], w_ref[...],
                     preferred_element_type=jnp.float32)      # (B, S)
    o_ref[0, 0] = jnp.sum(deepseq_ref[...] * energy)


# ---------------------- cached pallas_call builders ------------------------ #

def _build_call(kernel, n_in):
    """Single-shot pallas_call: all operands in VMEM, scalar result in SMEM."""
    return pl.pallas_call(
        kernel,
        out_shape=jax.ShapeDtypeStruct((1, 1), jnp.float32),
        in_specs=[pl.BlockSpec(memory_space=pltpu.MemorySpace.VMEM)] * n_in,
        out_specs=pl.BlockSpec(memory_space=pltpu.MemorySpace.SMEM),
    )


_SELF_DOT_CALL = _build_call(_self_dot_kernel, 1)
_FUSED_DOT_CALL = _build_call(_fused_dot_kernel, 2)
_GENERAL_CALL = _build_call(_general_kernel, 3)


# Jitted forwards: input packing and the [0, 0] scalar extraction fuse into
# the jitted graph; jax.jit caches per input-shape signature.
@jax.jit
def _dot_forward(deepseq):
    return _SELF_DOT_CALL(deepseq)[0, 0]


@jax.jit
def _general_forward(deepseq, govec, w_packed):
    ones = jnp.ones((govec.shape[0], 1), jnp.float32)
    govec_aug = jnp.concatenate([govec, ones], axis=1)        # (B, G+1)
    return _GENERAL_CALL(deepseq, govec_aug, w_packed)[0, 0]


@jax.jit
def _concat_forward(deepseq, govec, u_aug):
    one = jnp.ones((1, 1), jnp.float32)
    x_aug = jnp.concatenate([deepseq, govec, one], axis=1)    # (1, S+G+1)
    return _FUSED_DOT_CALL(x_aug, u_aug)[0, 0]


# --------------------------- module wrapper -------------------------------- #

class GoScore:
    """JAX/Pallas port of the PyTorch GoScore module."""

    def __init__(self, method, size_seq, size_go, key):
        self.method = method
        k1, k2, k3, k4 = jax.random.split(key, 4)
        if method == 'general':
            bound = 1.0 / (size_go ** 0.5)          # torch Linear default init
            # W stored transposed as (size_go, size_seq); bias (1, size_seq).
            self.w = jax.random.uniform(k1, (size_go, size_seq),
                                        jnp.float32, -bound, bound)
            self.b = jax.random.uniform(k2, (1, size_seq),
                                        jnp.float32, -bound, bound)
            # Packed (G+1, S) operand: one DMA instead of two.
            self.w_packed = jnp.concatenate([self.w, self.b], axis=0)
        elif method == 'concat':
            fan_in = size_seq + size_go
            bound = 1.0 / (fan_in ** 0.5)
            # Original (torch-equivalent) parameters, kept for loading / ref.
            self.w_seq = jax.random.uniform(k1, (size_seq, size_seq),
                                            jnp.float32, -bound, bound)
            self.w_go = jax.random.uniform(k2, (size_go, size_seq),
                                           jnp.float32, -bound, bound)
            self.b = jax.random.uniform(k3, (1, size_seq),
                                        jnp.float32, -bound, bound)
            # torch leaves self.v uninitialized (torch.FloatTensor); any
            # deterministic init is acceptable for parity of the kernel math.
            # TODO(synk): load v from a checkpoint for bit-level torch parity.
            self.v = jax.random.uniform(k4, (1, size_seq),
                                        jnp.float32, -1.0, 1.0)
            # Fold v into the parameters (one-time GEMV, amortized over calls):
            #   v . (ds @ w_seq + gv @ w_go + b)
            #     = ds . (w_seq @ v.T) + gv . (w_go @ v.T) + sum(v*b)
            u_seq = (self.w_seq @ self.v.T).T                 # (1, S)
            u_go = (self.w_go @ self.v.T).T                   # (1, G)
            c = jnp.sum(self.v * self.b).reshape(1, 1)        # (1, 1)
            self.u_aug = jnp.concatenate([u_seq, u_go, c], axis=1)

    def __call__(self, deepseq, govec):
        if self.method == 'dot':
            return _dot_forward(deepseq)
        elif self.method == 'general':
            return _general_forward(deepseq, govec, self.w_packed)
        elif self.method == 'concat':
            if deepseq.shape[0] != 1:
                # torch.dot would raise for batch > 1; do the same.
                raise ValueError("'concat' method requires batch size 1")
            return _concat_forward(deepseq, govec, self.u_aug)
        raise ValueError(self.method)


# ------------------------------ reference ---------------------------------- #

def go_score_ref(mod, deepseq, govec):
    if mod.method == 'dot':
        return jnp.dot(deepseq.reshape(-1), deepseq.reshape(-1))
    if mod.method == 'general':
        energy = govec @ mod.w + mod.b
        return jnp.dot(deepseq.reshape(-1), energy.reshape(-1))
    if mod.method == 'concat':
        energy = deepseq @ mod.w_seq + govec @ mod.w_go + mod.b
        return jnp.sum(mod.v * energy)
    raise ValueError(mod.method)


# -------------------------------- main -------------------------------------- #

if __name__ == "__main__":
    key = jax.random.PRNGKey(0)
    k_ds, k_gv, k_p1, k_p2, k_p3 = jax.random.split(key, 5)

    B, SIZE_SEQ, SIZE_GO = 2, 32, 16
    deepseq = jax.random.normal(k_ds, (B, SIZE_SEQ), jnp.float32)
    govec = jax.random.normal(k_gv, (B, SIZE_GO), jnp.float32)

    # 'general' attention score (the parameterized hot path)
    mod_general = GoScore('general', SIZE_SEQ, SIZE_GO, k_p1)
    e_general = jax.block_until_ready(mod_general(deepseq, govec))
    assert jnp.allclose(e_general, go_score_ref(mod_general, deepseq, govec),
                        rtol=1e-5, atol=1e-5)
    # second call exercises the jit cache (no re-trace / re-compile)
    jax.block_until_ready(mod_general(deepseq, govec))

    # 'dot' score (self inner product)
    mod_dot = GoScore('dot', SIZE_SEQ, SIZE_GO, k_p2)
    e_dot = jax.block_until_ready(mod_dot(deepseq, govec))
    assert jnp.allclose(e_dot, go_score_ref(mod_dot, deepseq, govec),
                        rtol=1e-5, atol=1e-5)

    # 'concat' score (batch == 1 only, per torch.dot semantics)
    mod_concat = GoScore('concat', SIZE_SEQ, SIZE_GO, k_p3)
    e_concat = jax.block_until_ready(mod_concat(deepseq[:1], govec[:1]))
    assert jnp.allclose(e_concat,
                        go_score_ref(mod_concat, deepseq[:1], govec[:1]),
                        rtol=1e-5, atol=1e-5)

    print("KERNEL_OK")
</pallas_src>

<mosaic_0001>
module attributes {stable_mosaic.version = 11 : i64} {
  func.func @_general_kernel(%arg0: memref<2x32xf32, #tpu.memory_space<vmem>>, %arg1: memref<2x17xf32, #tpu.memory_space<vmem>>, %arg2: memref<17x32xf32, #tpu.memory_space<vmem>>, %arg3: memref<1x1xf32, #tpu.memory_space<smem>>) attributes {dimension_semantics = [], scalar_prefetch = 0 : i64, scratch_operands = 0 : i64, tpu.core_type = #tpu.core_type<tc>} {
    %c0 = arith.constant 0 : index
    %c0_0 = arith.constant 0 : index
    %0 = vector.load %arg1[%c0, %c0_0] : memref<2x17xf32, #tpu.memory_space<vmem>>, vector<2x17xf32>
    %c0_1 = arith.constant 0 : index
    %c0_2 = arith.constant 0 : index
    %1 = vector.load %arg2[%c0_1, %c0_2] : memref<17x32xf32, #tpu.memory_space<vmem>>, vector<17x32xf32>
    %cst = arith.constant dense<0.000000e+00> : vector<2x32xf32>
    %2 = tpu.matmul %0, %1, %cst {dimension_numbers = #tpu.dot_dimension_numbers<[1], [0], [0], [1], [0, 0, 1, 1], [], []>} : vector<2x17xf32>, vector<17x32xf32>, vector<2x32xf32> -> vector<2x32xf32>
    %c0_3 = arith.constant 0 : index
    %c0_4 = arith.constant 0 : index
    %3 = vector.load %arg0[%c0_3, %c0_4] : memref<2x32xf32, #tpu.memory_space<vmem>>, vector<2x32xf32>
    %4 = arith.mulf %3, %2 : vector<2x32xf32>
    %5 = vector.shape_cast %4 : vector<2x32xf32> to vector<1x2x32xf32>
    %cst_5 = arith.constant dense<0.000000e+00> : vector<1xf32>
    %6 = vector.multi_reduction <add>, %5, %cst_5 [1, 2] : vector<1x2x32xf32> to vector<1xf32>
    %7 = vector.shape_cast %6 : vector<1xf32> to vector<1x1x1xf32>
    %8 = vector.extract %7[0, 0, 0] : f32 from vector<1x1x1xf32>
    %c0_6 = arith.constant 0 : index
    %c0_7 = arith.constant 0 : index
    %9 = memref.load %arg3[%c0_6, %c0_7] : memref<1x1xf32, #tpu.memory_space<smem>>
    memref.store %8, %arg3[%c0_6, %c0_7] : memref<1x1xf32, #tpu.memory_space<smem>>
    return
  }
}

</mosaic_0001>

<bundles_post_ra>
// kernel: _general_forward.1
= control target key start
LH: loop header
LB: loop body
LE: loop exit
PB: predicated region body
PF: predicated region fallthrough
CT: control target
= control target key end

     0   :  { %8 = vsyncpa [#allocation3], 0  ;;  %s233_s0 = inlined_call_operand.vmem [shape: f32[2,32], index: 0, kind: input, shape index: {}]   ;;  %s234_s1 = inlined_call_operand.vmem [shape: f32[2,17], index: 1, kind: input, shape index: {}]   ;;  %s235_s2 = inlined_call_operand.hbm [shape: f32[17,32], index: 2, kind: input, shape index: {}]   ;;  %s236_s3 = inlined_call_operand.hbm [shape: f32[1,1], index: 3, kind: output, shape index: {}]  }
   0x1   :  { %9 = vsyncpa [#allocation4], 0  ;;  %s195_s12 = smov [#allocation2]  }
   0x2   :  { %s19_s13 = sshll.u32 %s195_s12, 4  ;;  %s20_s13 = int_to_ptr.vmem [resolvable:$true] %s19_s13 }
   0x3   :  { %s171_s14 = scalar_lea.vmem %s20_s13, 384  ;;  %p176_p1 = scmp.lt.s32.totalorder %s20_s13, %s20_s13 }
   0x4   :  { %p172_p0 = scmp.ne.s32.totalorder %s20_s13, %s171_s14  ;;  %p177_p2 = scmp.lt.s32.totalorder %s171_s14, %s171_s14 }
   0x6   :  { %p178_p3 = por %p177_p2, %p176_p1 }
   0x8   :  { %p179_p4 = pnand %p178_p3, %p172_p0 }
   0xa   :  { %182 = shalt.err (!%p179_p4)
}
   0xb   :  { %s196_s15 = smov 128   ;;  %s197_s16 = smov 8  }
   0xc   :  { %25 = dma.hbm_to_vmem [thread:$0]  %s235_s2, 384, %s20_s13, [#allocation3], %s196_s15, %s196_s15, %s197_s16  }
   0xd   :  { %191 = dma.done.wait [#allocation3], 384  }
   0xe   :  { %192 = vsyncadd [#allocation3], 4294966912  ;;  %v198_v0 = vmov 0.0   ;;  %vm199_vm0 = vmmov 0   ;;  %vm37_vm1 = vcmask 1040384   ;;  %v31_v2 = vld [vmem:[#allocation2 + $0x8] sm:$0xff] }
   0xf   :  { %146 = vmatprep.subr.mxu0 %v198_v0  ;;  %152 = vmatprep.mubr.msk.f32.mxu0 %vm199_vm0, %v198_v0  ;;  %v32_v1 = vld [vmem:[#allocation2 + $0x10] sm:$0x1]  ;;  %v30_v3 = vld [vmem:[#allocation2] sm:$0xff]  ;;  %vm33_vm2 = vcmask 138240   ;;  %vm113_vm3 = vcmask 254976   ;;  %s200_s22 = smov [#allocation5]  }
  0x10   :  { %147 = vmatpush3.msk.msra.mxu0 %vm37_vm1, %v32_v1  ;;  %v29_v4 = vld [vmem:[%s234_s1] sm:$0x3] }
  0x11   :  { %148 = vmatprep.subr.mxu0 %v198_v0  ;;  %v111_v5 = vld [vmem:[%s233_s0] sm:$0x3] }
  0x12   :  { %149 = vmatpush3.msra.mxu0 %v31_v2 }
  0x13   :  { %150 = vmatprep.subr.mxu0 %v198_v0 }
  0x14   :  { %151 = vmatpush3.msra.mxu0 %v30_v3 }
  0x15   :  { %153 = vmatmul.mubr.msk.f32.vlgmr.msra.gmra.mxu0 %vm33_vm2, %v29_v4 }
  0xd5   :  { %v107_v6 = vpop.f32.mrf.mxu0 }
  0xd6   :  { %v112_v7 = vmul.f32 %v111_v5, %v107_v6 }
  0xd7   :  { %v154_v8 = vpop.f32.mrf.mxu0 }
  0xd8   :  { %v114_v9 = vsel %vm113_vm3, %v112_v7, 0.0 }
  0xd9   :  { %115 = vadd.xlane.f32.xlu0 %v114_v9 }
 0x162   :  { %v116_v10 = vpop.xlane.xlu0 %115 }
 0x163   :  { %v117_v11 = vrot.slane %v116_v10, 4 }
 0x165   :  { %v118_v12 = vadd.f32 %v117_v11, %v116_v10 }
 0x167   :  { %v119_v13 = vrot.slane %v118_v12, 2 }
 0x169   :  { %v120_v14 = vadd.f32 %v119_v13, %v118_v12 }
 0x16b   :  { %v121_v15 = vrot.slane %v120_v14, 1 }
 0x16d   :  { %v122_v16 = vadd.f32 %v121_v15, %v120_v14 }
 0x16f   :  { %155 = vpush %v122_v16 }
 0x1a0   :  { %s156_s1 = spop %155 }
 0x1a1   :  { %125 = sst [smem:[#allocation5]] %s156_s1 }
 0x1a2   :  { %133 = dma.smem_to_hbm %s200_s22, 16, %s236_s3, [#allocation4]  }
 0x1a3   :  { %193 = dma.done.wait [#allocation4], 16  }
 0x1a4   :  { %194 = vsyncadd [#allocation4], 4294967280 }
 0x1a5   :  { %137 = sfence }
 0x1a6   :  { %138 = vsyncpa [#allocation3], 1 }
 0x1a7   :  { %139 = vsyncpa [#allocation4], 1 }

</bundles_post_ra>
